<compile_context>
chip_gen: v5e
topology: v5e:2x2
jax: 0.10.0
libtpu: 0.0.40
codegen_flags: <defaults>
</compile_context>

<pallas_src>
import jax
import jax.numpy as jnp
from jax.experimental import pallas as pl
from jax.experimental.pallas import tpu as pltpu

_LANES = 128   # TPU lane width: batch tiles are multiples of this
_SUB = 8       # output rows (n_actions) padded to one sublane group


def _round_up(n, m):
    return ((n + m - 1) // m) * m


def _mlp_kernel(xt_ref, w1t_ref, b1t_ref, w2t_ref, b2t_ref, ot_ref):
    # xt: (obs, tb)    w1t: (hidden, obs)   b1t: (hidden, 1)
    # w2t: (8, hidden) b2t: (8, 1)          ot:  (8, tb)
    xt = xt_ref[...].astype(jnp.float32)          # matches torch's x.float()
    w1t = w1t_ref[...]
    obs, tb = xt.shape
    hidden = w1t.shape[0]

    # Layer 1: K = obs_size is tiny (4) -> unrolled outer-product MACs on the
    # VPU over fully packed (hidden, tb) vregs; avoids an underfilled MXU pass.
    h = jnp.broadcast_to(b1t_ref[...], (hidden, tb))
    for k in range(obs):                          # static unroll (obs is small)
        h = h + w1t[:, k:k + 1] * xt[k:k + 1, :]
    h = jnp.maximum(h, 0.0)                       # ReLU

    # Layer 2: single MXU pass; N = tb fills the MXU width, result tile is a
    # small lane-dense (8, tb) block -> unmasked vst, minimal HBM writeback.
    o = jnp.dot(w2t_ref[...], h, preferred_element_type=jnp.float32)
    ot_ref[...] = (o + b2t_ref[...]).astype(ot_ref.dtype)


def prepare_params(w1, b1, w2, b2):
    """One-time repack of parameters into the feature-major kernel layout.

    w1: (obs, hidden)  b1: (hidden,)  w2: (hidden, n_actions)  b2: (n_actions,)
    """
    obs, hidden = w1.shape
    n_actions = w2.shape[1]
    w1t = jnp.asarray(w1, jnp.float32).T                      # (hidden, obs)
    b1t = jnp.asarray(b1, jnp.float32).reshape(hidden, 1)     # (hidden, 1)
    w2t = jnp.zeros((_SUB, hidden), jnp.float32).at[:n_actions, :].set(
        jnp.asarray(w2, jnp.float32).T)                       # (8, hidden)
    b2t = jnp.zeros((_SUB, 1), jnp.float32).at[:n_actions, :].set(
        jnp.asarray(b2, jnp.float32).reshape(n_actions, 1))   # (8, 1)
    return dict(w1t=w1t, b1t=b1t, w2t=w2t, b2t=b2t,
                obs=obs, hidden=hidden, n_actions=n_actions)


def net_forward(x, params, *, max_tile=2048):
    """y = relu(x.float() @ w1 + b1) @ w2 + b2 for x of shape (batch, obs)."""
    w1t, b1t, w2t, b2t = params["w1t"], params["b1t"], params["w2t"], params["b2t"]
    obs, hidden, n_actions = params["obs"], params["hidden"], params["n_actions"]
    batch = x.shape[0]
    assert x.shape[1] == obs

    # Batch lives on the lane axis: pad to a multiple of 128 lanes and pick a
    # tile that yields >= 2 balanced grid steps when possible (v7x megacore)
    # while staying big (fewer per-step overheads) up to max_tile lanes.
    padded = _round_up(batch, _LANES)
    tb = min(max_tile, max(_LANES, _round_up(padded // 2, _LANES)))
    padded = _round_up(padded, tb)

    # Cast before the call (torch's x.float()) so the DMA moves f32, not f64.
    xt = x.astype(jnp.float32).T                               # (obs, batch)
    if padded != batch:
        xt = jnp.pad(xt, ((0, 0), (0, padded - batch)))

    out_t = pl.pallas_call(
        _mlp_kernel,
        out_shape=jax.ShapeDtypeStruct((_SUB, padded), jnp.float32),
        grid_spec=pltpu.PrefetchScalarGridSpec(
            num_scalar_prefetch=0,
            grid=(padded // tb,),
            in_specs=[
                pl.BlockSpec((obs, tb), lambda i: (0, i)),        # x^T tile
                pl.BlockSpec((hidden, obs), lambda i: (0, 0)),    # w1^T (resident)
                pl.BlockSpec((hidden, 1), lambda i: (0, 0)),      # b1   (resident)
                pl.BlockSpec((_SUB, hidden), lambda i: (0, 0)),   # w2^T (resident)
                pl.BlockSpec((_SUB, 1), lambda i: (0, 0)),        # b2   (resident)
            ],
            out_specs=pl.BlockSpec((_SUB, tb), lambda i: (0, i)),
        ),
        compiler_params=pltpu.CompilerParams(
            dimension_semantics=("parallel",),   # v7x: shard lane tiles over 2 TCs
        ),
    )(xt, w1t, b1t, w2t, b2t)

    # Tiny (n_actions x batch) slab: drop sublane/lane padding, restore the
    # (batch, n_actions) convention of the torch module.
    return out_t[:n_actions, :batch].T


def init_params(key, obs_size, hidden_size, n_actions):
    """Deterministic init mimicking torch.nn.Linear default (U[-1/sqrt(fan_in), ...])."""
    k1, k2, k3, k4 = jax.random.split(key, 4)
    lim1 = 1.0 / jnp.sqrt(jnp.float32(obs_size))
    lim2 = 1.0 / jnp.sqrt(jnp.float32(hidden_size))
    w1 = jax.random.uniform(k1, (obs_size, hidden_size), jnp.float32, -lim1, lim1)
    b1 = jax.random.uniform(k2, (hidden_size,), jnp.float32, -lim1, lim1)
    w2 = jax.random.uniform(k3, (hidden_size, n_actions), jnp.float32, -lim2, lim2)
    b2 = jax.random.uniform(k4, (n_actions,), jnp.float32, -lim2, lim2)
    return w1, b1, w2, b2


def _ref(x, w1, b1, w2, b2):
    return jnp.maximum(x.astype(jnp.float32) @ w1 + b1[None, :], 0.0) @ w2 + b2[None, :]


if __name__ == "__main__":
    # CartPole sizes: obs_size=4, hidden=32, n_actions=2.
    obs_size, hidden_size, n_actions = 4, 32, 2

    key = jax.random.PRNGKey(0)
    kx, kx2, kp = jax.random.split(key, 3)
    w1, b1, w2, b2 = init_params(kp, obs_size, hidden_size, n_actions)
    params = prepare_params(w1, b1, w2, b2)   # one-time layout prep (hoisted)

    # Small single-step batch (one 128-lane tile).
    x_small = jax.random.normal(kx, (8, obs_size), jnp.float32)
    out_small = net_forward(x_small, params)
    jax.block_until_ready(out_small)
    assert out_small.shape == (8, n_actions)
    assert jnp.allclose(out_small, _ref(x_small, w1, b1, w2, b2), atol=1e-5, rtol=1e-5)

    # Larger "whole CEM batch of episode steps" — exercises the 2-step lane
    # grid (600 -> 768 padded lanes, tb=384) and the (8, tb) lane-dense output.
    x_big = jax.random.normal(kx2, (600, obs_size), jnp.float32)
    out_big = net_forward(x_big, params)
    jax.block_until_ready(out_big)
    assert out_big.shape == (600, n_actions)
    assert jnp.allclose(out_big, _ref(x_big, w1, b1, w2, b2), atol=1e-4, rtol=1e-4)

    print("KERNEL_OK")
</pallas_src>

<mosaic_0001>
module attributes {stable_mosaic.version = 11 : i64} {
  func.func @_mlp_kernel(%arg0: i32, %arg1: memref<4x128xf32, #tpu.memory_space<vmem>>, %arg2: memref<32x4xf32, #tpu.memory_space<vmem>>, %arg3: memref<32x1xf32, #tpu.memory_space<vmem>>, %arg4: memref<8x32xf32, #tpu.memory_space<vmem>>, %arg5: memref<8x1xf32, #tpu.memory_space<vmem>>, %arg6: memref<8x128xf32, #tpu.memory_space<vmem>>) attributes {dimension_semantics = [#tpu.dimension_semantics<parallel>], iteration_bounds = array<i64: 1>, scalar_prefetch = 0 : i64, scratch_operands = 0 : i64, tpu.core_type = #tpu.core_type<tc>, window_params = [{transform_indices = @transform_0, window_bounds = array<i64: 4, 128>}, {pipeline_mode = #tpu.pipeline_mode<synchronous>, transform_indices = @transform_1, window_bounds = array<i64: 32, 4>}, {pipeline_mode = #tpu.pipeline_mode<synchronous>, transform_indices = @transform_2, window_bounds = array<i64: 32, 1>}, {pipeline_mode = #tpu.pipeline_mode<synchronous>, transform_indices = @transform_3, window_bounds = array<i64: 8, 32>}, {pipeline_mode = #tpu.pipeline_mode<synchronous>, transform_indices = @transform_4, window_bounds = array<i64: 8, 1>}, {transform_indices = @transform_5, window_bounds = array<i64: 8, 128>}]} {
    %c0 = arith.constant 0 : index
    %c0_0 = arith.constant 0 : index
    %0 = vector.load %arg1[%c0, %c0_0] : memref<4x128xf32, #tpu.memory_space<vmem>>, vector<4x128xf32>
    %c0_1 = arith.constant 0 : index
    %c0_2 = arith.constant 0 : index
    %1 = vector.load %arg2[%c0_1, %c0_2] : memref<32x4xf32, #tpu.memory_space<vmem>>, vector<32x4xf32>
    %c0_3 = arith.constant 0 : index
    %c0_4 = arith.constant 0 : index
    %2 = vector.load %arg3[%c0_3, %c0_4] : memref<32x1xf32, #tpu.memory_space<vmem>>, vector<32x1xf32>
    %3 = vector.shape_cast %2 : vector<32x1xf32> to vector<32x1xf32>
    %4 = vector.broadcast %3 : vector<32x1xf32> to vector<32x128xf32>
    %5 = vector.extract_strided_slice %1 {offsets = [0, 0], sizes = [32, 1], strides = [1, 1]} : vector<32x4xf32> to vector<32x1xf32>
    %6 = vector.extract_strided_slice %0 {offsets = [0, 0], sizes = [1, 128], strides = [1, 1]} : vector<4x128xf32> to vector<1x128xf32>
    %7 = vector.broadcast %5 : vector<32x1xf32> to vector<32x128xf32>
    %8 = vector.broadcast %6 : vector<1x128xf32> to vector<32x128xf32>
    %9 = arith.mulf %7, %8 : vector<32x128xf32>
    %10 = arith.addf %4, %9 : vector<32x128xf32>
    %11 = vector.extract_strided_slice %1 {offsets = [0, 1], sizes = [32, 1], strides = [1, 1]} : vector<32x4xf32> to vector<32x1xf32>
    %12 = vector.extract_strided_slice %0 {offsets = [1, 0], sizes = [1, 128], strides = [1, 1]} : vector<4x128xf32> to vector<1x128xf32>
    %13 = vector.broadcast %11 : vector<32x1xf32> to vector<32x128xf32>
    %14 = vector.broadcast %12 : vector<1x128xf32> to vector<32x128xf32>
    %15 = arith.mulf %13, %14 : vector<32x128xf32>
    %16 = arith.addf %10, %15 : vector<32x128xf32>
    %17 = vector.extract_strided_slice %1 {offsets = [0, 2], sizes = [32, 1], strides = [1, 1]} : vector<32x4xf32> to vector<32x1xf32>
    %18 = vector.extract_strided_slice %0 {offsets = [2, 0], sizes = [1, 128], strides = [1, 1]} : vector<4x128xf32> to vector<1x128xf32>
    %19 = vector.broadcast %17 : vector<32x1xf32> to vector<32x128xf32>
    %20 = vector.broadcast %18 : vector<1x128xf32> to vector<32x128xf32>
    %21 = arith.mulf %19, %20 : vector<32x128xf32>
    %22 = arith.addf %16, %21 : vector<32x128xf32>
    %23 = vector.extract_strided_slice %1 {offsets = [0, 3], sizes = [32, 1], strides = [1, 1]} : vector<32x4xf32> to vector<32x1xf32>
    %24 = vector.extract_strided_slice %0 {offsets = [3, 0], sizes = [1, 128], strides = [1, 1]} : vector<4x128xf32> to vector<1x128xf32>
    %25 = vector.broadcast %23 : vector<32x1xf32> to vector<32x128xf32>
    %26 = vector.broadcast %24 : vector<1x128xf32> to vector<32x128xf32>
    %27 = arith.mulf %25, %26 : vector<32x128xf32>
    %28 = arith.addf %22, %27 : vector<32x128xf32>
    %cst = arith.constant 0.000000e+00 : f32
    %29 = vector.broadcast %cst : f32 to vector<32x128xf32>
    %30 = arith.maximumf %28, %29 : vector<32x128xf32>
    %c0_5 = arith.constant 0 : index
    %c0_6 = arith.constant 0 : index
    %31 = vector.load %arg4[%c0_5, %c0_6] : memref<8x32xf32, #tpu.memory_space<vmem>>, vector<8x32xf32>
    %cst_7 = arith.constant dense<0.000000e+00> : vector<8x128xf32>
    %32 = tpu.matmul %31, %30, %cst_7 {dimension_numbers = #tpu.dot_dimension_numbers<[1], [0], [0], [1], [0, 0, 1, 1], [], []>} : vector<8x32xf32>, vector<32x128xf32>, vector<8x128xf32> -> vector<8x128xf32>
    %c0_8 = arith.constant 0 : index
    %c0_9 = arith.constant 0 : index
    %33 = vector.load %arg5[%c0_8, %c0_9] : memref<8x1xf32, #tpu.memory_space<vmem>>, vector<8x1xf32>
    %34 = vector.broadcast %33 : vector<8x1xf32> to vector<8x128xf32>
    %35 = arith.addf %32, %34 : vector<8x128xf32>
    %c0_10 = arith.constant 0 : index
    %c0_11 = arith.constant 0 : index
    %36 = vector.load %arg6[%c0_10, %c0_11] : memref<8x128xf32, #tpu.memory_space<vmem>>, vector<8x128xf32>
    tpu.vector_store %arg6[%c0_10, %c0_11], %35 {strides = array<i32>} : memref<8x128xf32, #tpu.memory_space<vmem>>, vector<8x128xf32>,
    return
  }
  func.func @transform_0(%arg0: i32) -> (i32, i32) {
    %c0_i32 = arith.constant 0 : i32
    %c0_i32_0 = arith.constant 0 : i32
    return %c0_i32, %arg0 : i32, i32
  }
  func.func @transform_1(%arg0: i32) -> (i32, i32) {
    %c0_i32 = arith.constant 0 : i32
    %c0_i32_0 = arith.constant 0 : i32
    %c0_i32_1 = arith.constant 0 : i32
    return %c0_i32, %c0_i32_0 : i32, i32
  }
  func.func @transform_2(%arg0: i32) -> (i32, i32) {
    %c0_i32 = arith.constant 0 : i32
    %c0_i32_0 = arith.constant 0 : i32
    %c0_i32_1 = arith.constant 0 : i32
    return %c0_i32, %c0_i32_0 : i32, i32
  }
  func.func @transform_3(%arg0: i32) -> (i32, i32) {
    %c0_i32 = arith.constant 0 : i32
    %c0_i32_0 = arith.constant 0 : i32
    %c0_i32_1 = arith.constant 0 : i32
    return %c0_i32, %c0_i32_0 : i32, i32
  }
  func.func @transform_4(%arg0: i32) -> (i32, i32) {
    %c0_i32 = arith.constant 0 : i32
    %c0_i32_0 = arith.constant 0 : i32
    %c0_i32_1 = arith.constant 0 : i32
    return %c0_i32, %c0_i32_0 : i32, i32
  }
  func.func @transform_5(%arg0: i32) -> (i32, i32) {
    %c0_i32 = arith.constant 0 : i32
    %c0_i32_0 = arith.constant 0 : i32
    return %c0_i32, %arg0 : i32, i32
  }
}

</mosaic_0001>

<bundles_post_ra>
// kernel: tpu_custom_call.1
= control target key start
LH: loop header
LB: loop body
LE: loop exit
PB: predicated region body
PF: predicated region fallthrough
CT: control target
= control target key end

     0   :  { %v257_v3 = vmov 0   ;;  %s328_s0 = inlined_call_operand.vmem [shape: f32[4,128], index: 0, kind: input, shape index: {}]   ;;  %s329_s1 = inlined_call_operand.vmem [shape: f32[32,4], index: 1, kind: input, shape index: {}]   ;;  %s330_s2 = inlined_call_operand.vmem [shape: f32[32,1], index: 2, kind: input, shape index: {}]   ;;  %s331_s3 = inlined_call_operand.vmem [shape: f32[8,32], index: 3, kind: input, shape index: {}]   ;;  %s332_s4 = inlined_call_operand.vmem [shape: f32[8,1], index: 4, kind: input, shape index: {}]   ;;  %s333_s5 = inlined_call_operand.hbm [shape: f32[8,128], index: 5, kind: output, shape index: {}]  }
   0x1   :  { %v28_v0 = vld [vmem:[%s330_s2 + $0x10] sm:$0xff]  ;;  %v25_v1 = vld [vmem:[%s329_s1 + $0x18] sm:$0xff]  ;;  %215 = vset.pattern.permute.xlu2 %v257_v3  ;;  %213 = vset.pattern.permute.xlu1 %v257_v3 }
   0x2   :  { %v24_v2 = vld [vmem:[%s329_s1 + $0x10] sm:$0xff]  ;;  %212 = vset.pattern.permute.xlu0 %v257_v3  ;;  %42 = vperm.xlu2 %215, %v28_v0  }
   0x3   :  { %10 = vsyncpa [#allocation3], 0  ;;  %67 = vperm.xlu0 %212, %v25_v1   ;;  %62 = vperm.xlu1 %213, %v24_v2   ;;  %v23_v4 = vld [vmem:[%s329_s1 + $0x8] sm:$0xff]  ;;  %v29_v5 = vld [vmem:[%s330_s2 + $0x18] sm:$0xff]  ;;  %v258_v6 = vmov 1   ;;  %v259_v8 = vmov 2  }
   0x4   :  { %v27_v7 = vld [vmem:[%s330_s2 + $0x8] sm:$0xff]  ;;  %v22_v9 = vld [vmem:[%s329_s1] sm:$0xff]  ;;  %v260_v11 = vmov 3   ;;  %vm165_vm0 = vcmask 261120   ;;  %s261_s11 = smov [#allocation2]   ;;  %s197_s15 = sshll.u32 %s333_s5, 4  ;;  %s198_s15 = int_to_ptr.hbm [resolvable:$true] %s197_s15 }
   0x5   :  { %v26_v10 = vld [vmem:[%s330_s2] sm:$0xff]  ;;  %s195_s12 = sshll.u32 %s261_s11, 4  ;;  %s196_s12 = int_to_ptr.vmem [resolvable:$true] %s195_s12 }
   0x6   :  { %v21_v23 = vld [vmem:[%s328_s0] sm:$0xf] }
   0x7   :  { %v70_v25 = vperm.slane %v21_v23, 0  ;;  %v95_v28 = vperm.slane %v21_v23, 1  ;;  %v120_v32 = vperm.slane %v21_v23, 2  ;;  %v145_v41 = vperm.slane %v21_v23, 3  ;;  %v159_v57 = vld [vmem:[%s332_s4] sm:$0xff] }
   0xa   :  { %57 = vperm.xlu2 %215, %v23_v4  }
   0xb   :  { %47 = vperm.xlu0 %212, %v29_v5   ;;  %214 = vset.pattern.permute.xlu1 %v258_v6 }
   0xc   :  { %92 = vperm.xlu1 %214, %v25_v1  }
  0x12   :  { %37 = vperm.xlu2 %215, %v27_v7  }
  0x13   :  { %216 = vset.pattern.permute.xlu0 %v258_v6 }
  0x14   :  { %88 = vperm.xlu0 %216, %v24_v2   ;;  %217 = vset.pattern.permute.xlu1 %v259_v8 }
  0x15   :  { %117 = vperm.xlu1 %217, %v25_v1  }
  0x1a   :  { %219 = vset.pattern.permute.xlu2 %v258_v6 }
  0x1b   :  { %84 = vperm.xlu2 %219, %v23_v4  }
  0x1c   :  { %220 = vset.pattern.permute.xlu0 %v259_v8 }
  0x1d   :  { %113 = vperm.xlu0 %220, %v24_v2   ;;  %218 = vset.pattern.permute.xlu1 %v257_v3 }
  0x1e   :  { %52 = vperm.xlu1 %218, %v22_v9  }
  0x23   :  { %222 = vset.pattern.permute.xlu2 %v257_v3 }
  0x24   :  { %32 = vperm.xlu2 %222, %v26_v10   ;;  %v158_v10 = vld [vmem:[%s331_s3] sm:$0xff] }
  0x25   :  { %225 = vset.pattern.permute.xlu0 %v260_v11 }
  0x26   :  { %138 = vperm.xlu0 %225, %v24_v2   ;;  %221 = vset.pattern.permute.xlu1 %v260_v11 }
  0x27   :  { %142 = vperm.xlu1 %221, %v25_v1  }
  0x2c   :  { %224 = vset.pattern.permute.xlu2 %v259_v8 }
  0x2d   :  { %109 = vperm.xlu2 %224, %v23_v4  }
  0x2e   :  { %230 = vset.pattern.permute.xlu0 %v257_v3 }
  0x2f   :  { %223 = vset.pattern.permute.xlu1 %v258_v6 }
  0x30   :  { %80 = vperm.xlu1 %223, %v22_v9  }
  0x35   :  { %227 = vset.pattern.permute.xlu2 %v260_v11 }
  0x36   :  { %134 = vperm.xlu2 %227, %v23_v4  }
  0x38   :  { %226 = vset.pattern.permute.xlu1 %v259_v8 }
  0x39   :  { %105 = vperm.xlu1 %226, %v22_v9  }
  0x3e   :  { %229 = vset.pattern.permute.xlu2 %v257_v3 }
  0x3f   :  { %162 = vperm.xlu2 %229, %v159_v57  }
  0x41   :  { %228 = vset.pattern.permute.xlu1 %v260_v11 }
  0x42   :  { %130 = vperm.xlu1 %228, %v22_v9  }
  0x5c   :  { %v43_v12 = vpop.permute.xlu2 %42 }
  0x64   :  { %v58_v13 = vpop.permute.xlu2 %57 }
  0x65   :  { %v72_v30 = vmul.f32 %v70_v25, %v58_v13 }
  0x6c   :  { %v38_v14 = vpop.permute.xlu2 %37 }
  0x6d   :  { %v76_v36 = vadd.f32 %v72_v30, %v38_v14 }
  0x75   :  { %v63_v15 = vpop.permute.xlu1 %62  ;;  %v68_v16 = vpop.permute.xlu0 %67 }
  0x76   :  { %v85_v17 = vpop.permute.xlu2 %84  ;;  %v74_v27 = vmul.f32 %v70_v25, %v68_v16  ;;  %v73_v31 = vmul.f32 %v70_v25, %v63_v15 }
  0x77   :  { %v97_v37 = vmul.f32 %v95_v28, %v85_v17 }
  0x78   :  { %v77_v38 = vadd.f32 %v73_v31, %v43_v12 }
  0x79   :  { %v101_v47 = vadd.f32 %v97_v37, %v76_v36 }
  0x7d   :  { %v48_v18 = vpop.permute.xlu0 %47 }
  0x7e   :  { %v93_v19 = vpop.permute.xlu1 %92  ;;  %v33_v20 = vpop.permute.xlu2 %32  ;;  %v78_v33 = vadd.f32 %v74_v27, %v48_v18 }
  0x7f   :  { %v99_v34 = vmul.f32 %v95_v28, %v93_v19 }
  0x81   :  { %v103_v43 = vadd.f32 %v99_v34, %v78_v33 }
  0x86   :  { %v89_v21 = vpop.permute.xlu0 %88 }
  0x87   :  { %v118_v22 = vpop.permute.xlu1 %117  ;;  %v110_v24 = vpop.permute.xlu2 %109  ;;  %v98_v35 = vmul.f32 %v95_v28, %v89_v21 }
  0x88   :  { %v124_v39 = vmul.f32 %v120_v32, %v118_v22  ;;  %v122_v45 = vmul.f32 %v120_v32, %v110_v24 }
  0x89   :  { %v102_v44 = vadd.f32 %v98_v35, %v77_v38 }
  0x8a   :  { %v128_v53 = vadd.f32 %v124_v39, %v103_v43  ;;  %v126_v54 = vadd.f32 %v122_v45, %v101_v47 }
  0x8f   :  { %v114_v26 = vpop.permute.xlu0 %113 }
  0x90   :  { %v53_v29 = vpop.permute.xlu1 %52  ;;  %v123_v40 = vmul.f32 %v120_v32, %v114_v26  ;;  %v135_v42 = vpop.permute.xlu2 %134 }
  0x91   :  { %v147_v51 = vmul.f32 %v145_v41, %v135_v42  ;;  %v71_v0 = vmul.f32 %v70_v25, %v53_v29 }
  0x92   :  { %v127_v50 = vadd.f32 %v123_v40, %v102_v44 }
  0x93   :  { %v151_v59 = vadd.f32 %v147_v51, %v126_v54  ;;  %v75_v2 = vadd.f32 %v71_v0, %v33_v20 }
  0x95   :  { %v155_v62 = vmax.f32 %v151_v59, 0.0 }
  0x98   :  { %v139_v46 = vpop.permute.xlu0 %138 }
  0x99   :  { %v148_v48 = vmul.f32 %v145_v41, %v139_v46  ;;  %v143_v49 = vpop.permute.xlu1 %142  ;;  %v163_v11 = vpop.permute.xlu2 %162 }
  0x9a   :  { %v149_v52 = vmul.f32 %v145_v41, %v143_v49 }
  0x9b   :  { %v152_v56 = vadd.f32 %v148_v48, %v127_v50 }
  0x9c   :  { %v153_v55 = vadd.f32 %v149_v52, %v128_v53 }
  0x9d   :  { %v156_v60 = vmax.f32 %v152_v56, 0.0 }
  0x9e   :  { %v157_v58 = vmax.f32 %v153_v55, 0.0 }
  0xa0   :  { %181 = vmatpush.msra.mxu0 %v157_v58 }
  0xa2   :  { %v81_v61 = vpop.permute.xlu1 %80  ;;  %182 = vmatpush.msra.mxu0 %v156_v60 }
  0xa3   :  { %v96_v1 = vmul.f32 %v95_v28, %v81_v61 }
  0xa4   :  { %183 = vmatpush.msra.mxu0 %v155_v62 }
  0xa5   :  { %v100_v4 = vadd.f32 %v96_v1, %v75_v2 }
  0xab   :  { %v106_v63 = vpop.permute.xlu1 %105 }
  0xac   :  { %v121_v3 = vmul.f32 %v120_v32, %v106_v63 }
  0xae   :  { %v125_v6 = vadd.f32 %v121_v3, %v100_v4 }
  0xb4   :  { %v131_v5 = vpop.permute.xlu1 %130 }
  0xb5   :  { %v146_v7 = vmul.f32 %v145_v41, %v131_v5 }
  0xb7   :  { %v150_v8 = vadd.f32 %v146_v7, %v125_v6 }
  0xb9   :  { %v154_v9 = vmax.f32 %v150_v8, 0.0 }
  0xbb   :  { %184 = vmatpush.msra.mxu0 %v154_v9 }
  0xbc   :  { %206 = vmatmul.msk.f32.vlgmr.msra.gmra.mxu0 %vm165_vm0, %v158_v10 }
 0x139   :  { %v186_v12 = vpop.f32.mrf.mxu0 }
 0x13a   :  { %v187_v13 = vadd.f32 %v186_v12, %v163_v11 }
 0x13c   :  { %189 = vst [vmem:[#allocation2] sm:$0xff] %v187_v13 }
 0x13d   :  { %200 = dma.vmem_to_hbm [thread:$0]  %s196_s12, 128, %s198_s15, [#allocation3]  }
 0x13e   :  { %255 = dma.done.wait [#allocation3], 128  }
 0x13f   :  { %256 = vsyncadd [#allocation3], 4294967168 }
 0x140   :  { %205 = vsyncpa [#allocation3], 1 }

</bundles_post_ra>
